<compile_context>
chip_gen: v6e
topology: v6e:2x2x1
jax: 0.10.0
libtpu: 0.0.40
codegen_flags: <defaults>
</compile_context>

<pallas_src>
import functools

import jax
import jax.numpy as jnp
import numpy as np
from jax import lax
from jax.experimental import pallas as pl
from jax.experimental.pallas import tpu as pltpu


_VOCAB_CHUNK = 512


# ---------------------------------------------------------------------------
# Kernels
# ---------------------------------------------------------------------------
def _gather_rows_f32(ids_row, emb_ref, vocab_chunk, precision):
    """Transposed one-hot MXU gather.

    ids_row : (1, TS) int32
    emb_ref : (V, D)  VMEM-resident table
    returns : (TS, D) float32
    """
    ts = ids_row.shape[1]
    vocab, d = emb_ref.shape
    acc = jnp.zeros((ts, d), jnp.float32)
    for off in range(0, vocab, vocab_chunk):
        vc = min(vocab_chunk, vocab - off)
        # (vc, TS) sublane iota compared against the (1, TS) ids row:
        # sublane broadcast, no lane broadcast / XLU needed.
        iota = lax.broadcasted_iota(jnp.int32, (vc, ts), 0) + off
        onehot_t = (iota == ids_row).astype(emb_ref.dtype)          # (vc, TS)
        acc = acc + lax.dot_general(
            onehot_t, emb_ref[pl.ds(off, vc), :],
            dimension_numbers=(((0,), (0,)), ((), ())),              # contract dim 0
            preferred_element_type=jnp.float32,
            precision=precision)
    return acc


def _pos_emb_kernel(ids_ref, emb_ref, pe_ref, out_ref, *, vocab_chunk, precision):
    # ids_ref : (B, TS) int32   -- all batch rows for this sequence tile
    # emb_ref : (V, D)          -- whole table, single resident VMEM copy
    # pe_ref  : (TS, D)         -- PE tile (reused across the batch)
    # out_ref : (1, TS, D)
    b = pl.program_id(1)
    ids_row = ids_ref[pl.ds(b, 1), :]                                # (1, TS)
    gathered = _gather_rows_f32(ids_row, emb_ref, vocab_chunk, precision)
    out_ref[0] = (gathered + pe_ref[...].astype(jnp.float32)).astype(out_ref.dtype)


def _pos_emb_dropout_kernel(ids_ref, emb_ref, pe_ref, mask_ref, out_ref, *,
                            vocab_chunk, precision):
    # mask_ref : (1, TS, D) f32 pre-scaled keep mask (0 or 1/keep_prob).
    b = pl.program_id(1)
    ids_row = ids_ref[pl.ds(b, 1), :]
    y = _gather_rows_f32(ids_row, emb_ref, vocab_chunk, precision)
    y = y + pe_ref[...].astype(jnp.float32)
    out_ref[0] = (y * mask_ref[0]).astype(out_ref.dtype)


# ---------------------------------------------------------------------------
# Wrapper
# ---------------------------------------------------------------------------
def _pick_seq_tile(seq_len, emb_dim, table_bytes, budget_bytes=40 << 20):
    """TS must be a multiple of 128 (lane-dense ids / unmasked stores) or the
    full sequence; pick the largest tile that keeps VMEM usage under budget."""
    for ts in (1024, 512, 256, 128):
        if seq_len % ts:
            continue
        tile_bytes = 6 * ts * emb_dim * 4   # out/PE/mask double buffers + acc
        if table_bytes + tile_bytes <= budget_bytes:
            return ts
    return seq_len


def positional_embedding_fwd(ids, emb_table, pos_enc, *, dropout_p=0.0,
                             train=False, seed=0):
    """ids: (B, S) int32, emb_table: (V, D), pos_enc: (S, D) -> (B, S, D)."""
    B, S = ids.shape
    V, D = emb_table.shape
    assert pos_enc.shape == (S, D)

    out_dtype = emb_table.dtype
    out_isz = jnp.dtype(out_dtype).itemsize
    pe_isz = jnp.dtype(pos_enc.dtype).itemsize
    table_bytes = V * D * out_isz
    # TODO(synk): above ~48 MiB the table no longer fits resident in VMEM
    # (v7x: 64 MiB/TC); switch to the manual HBM row-gather path.

    TS = _pick_seq_tile(S, D, table_bytes)
    n_s = S // TS
    vocab_chunk = min(V, _VOCAB_CHUNK)
    use_dropout = bool(train) and float(dropout_p) > 0.0
    keep_prob = 1.0 - float(dropout_p)

    # Exact row selection: HIGHEST for an f32 table; bf16 tables already select
    # exactly with 0/1 coefficients at native MXU rate.
    precision = (lax.Precision.HIGHEST if emb_table.dtype == jnp.float32
                 else lax.Precision.DEFAULT)

    ids2 = ids.astype(jnp.int32)                     # (B, S) lane-dense blocks
    grid = (n_s, B)                                  # batch innermost: PE reuse

    in_specs = [
        pl.BlockSpec((B, TS), lambda s, b: (0, s)),                  # ids tile
        pl.BlockSpec(memory_space=pltpu.MemorySpace.VMEM),           # table x1
        pl.BlockSpec((TS, D), lambda s, b: (s, 0)),                  # PE tile
    ]
    out_spec = pl.BlockSpec((1, TS, D), lambda s, b: (b, s, 0))
    out_shape = jax.ShapeDtypeStruct((B, S, D), out_dtype)

    vmem_need = (table_bytes
                 + 2 * B * TS * 4                       # ids tiles
                 + 2 * TS * D * pe_isz                  # PE tiles
                 + 2 * TS * D * out_isz                 # out tiles
                 + (2 * TS * D * 4 if use_dropout else 0)
                 + vocab_chunk * TS * (4 + out_isz)     # iota + one-hot chunk
                 + TS * D * 4)                          # f32 accumulator
    vmem_limit = int(min(max(int(vmem_need * 1.25) + (2 << 20), 4 << 20),
                         100 << 20))
    cparams = pltpu.CompilerParams(
        dimension_semantics=("parallel", "parallel"),    # disjoint outputs
        vmem_limit_bytes=vmem_limit)

    bytes_accessed = (B * S * 4 + table_bytes + S * D * pe_isz
                      + B * S * D * out_isz
                      + (B * S * D * 4 if use_dropout else 0))
    cost = pl.CostEstimate(flops=2 * B * S * V * D, transcendentals=0,
                           bytes_accessed=bytes_accessed)

    if not use_dropout:
        # Eval mode (or p=0): dropout is identity, matching nn.Dropout.eval().
        kern = functools.partial(_pos_emb_kernel, vocab_chunk=vocab_chunk,
                                 precision=precision)
        return pl.pallas_call(
            kern, out_shape=out_shape, grid=grid,
            in_specs=in_specs, out_specs=out_spec,
            compiler_params=cparams, cost_estimate=cost,
        )(ids2, emb_table, pos_enc)

    # Training mode: precomputed, pre-scaled inverted-dropout keep mask.
    key = jax.random.PRNGKey(seed)
    mask = (jax.random.bernoulli(key, keep_prob, (B, S, D))
            .astype(jnp.float32) / keep_prob)
    kern = functools.partial(_pos_emb_dropout_kernel, vocab_chunk=vocab_chunk,
                             precision=precision)
    in_specs_t = in_specs + [pl.BlockSpec((1, TS, D), lambda s, b: (b, s, 0))]
    return pl.pallas_call(
        kern, out_shape=out_shape, grid=grid,
        in_specs=in_specs_t, out_specs=out_spec,
        compiler_params=cparams, cost_estimate=cost,
    )(ids2, emb_table, pos_enc, mask)


# ---------------------------------------------------------------------------
# Parameter / buffer construction (mirrors the PyTorch __init__)
# ---------------------------------------------------------------------------
def make_positional_encoding(seq_length, embedding_dim):
    position = jnp.arange(seq_length, dtype=jnp.float32)[:, None]             # (S, 1)
    div = 10000.0 ** (jnp.arange(0, embedding_dim, 2, dtype=jnp.float32)
                      / embedding_dim)                                         # (D/2,)
    angles = position / div                                                    # (S, D/2)
    pe = jnp.zeros((seq_length, embedding_dim), jnp.float32)
    pe = pe.at[:, 0::2].set(jnp.sin(angles))
    pe = pe.at[:, 1::2].set(jnp.cos(angles))
    return pe


if __name__ == "__main__":
    # Small, module-consistent shapes.
    num_embeddings = 64    # vocabulary size V
    embedding_dim = 128    # D (lane-dense: multiple of 128)
    seq_length = 8         # S
    batch = 2              # B
    dropout_p = 0.1

    key = jax.random.PRNGKey(0)
    k_emb, k_ids = jax.random.split(key)

    # nn.Embedding default init is N(0, 1).
    emb_table = jax.random.normal(k_emb, (num_embeddings, embedding_dim),
                                  dtype=jnp.float32)
    pos_enc = make_positional_encoding(seq_length, embedding_dim)
    ids = jax.random.randint(k_ids, (batch, seq_length), 0, num_embeddings,
                             dtype=jnp.int32)

    # Eval-mode forward (dropout = identity), as in module.eval().
    out = positional_embedding_fwd(ids, emb_table, pos_enc,
                                   dropout_p=dropout_p, train=False)
    out = jax.block_until_ready(out)

    ref = np.asarray(emb_table)[np.asarray(ids)] + np.asarray(pos_enc)[None, :, :]
    assert out.shape == (batch, seq_length, embedding_dim)
    np.testing.assert_allclose(np.asarray(out), ref, rtol=1e-6, atol=1e-6)

    # Training-mode forward: every element must be 0 (dropped) or
    # ref / keep_prob (kept, inverted-dropout scaling).
    out_t = positional_embedding_fwd(ids, emb_table, pos_enc,
                                     dropout_p=dropout_p, train=True, seed=123)
    out_t = jax.block_until_ready(out_t)
    ot = np.asarray(out_t)
    keep_prob = 1.0 - dropout_p
    scaled = ref / keep_prob
    ok = np.isclose(ot, 0.0, atol=1e-6) | np.isclose(ot, scaled,
                                                     rtol=1e-5, atol=1e-6)
    assert ot.shape == ref.shape and bool(np.all(ok))

    print("KERNEL_OK")
</pallas_src>

<mosaic_0001>
module attributes {stable_mosaic.version = 11 : i64} {
  func.func @_pos_emb_kernel(%arg0: i32, %arg1: i32, %arg2: memref<2x8xi32, #tpu.memory_space<vmem>>, %arg3: memref<64x128xf32, #tpu.memory_space<vmem>>, %arg4: memref<8x128xf32, #tpu.memory_space<vmem>>, %arg5: memref<1x8x128xf32, #tpu.memory_space<vmem>>) attributes {dimension_semantics = [#tpu.dimension_semantics<parallel>, #tpu.dimension_semantics<parallel>], iteration_bounds = array<i64: 1, 2>, scalar_prefetch = 0 : i64, scratch_operands = 0 : i64, tpu.core_type = #tpu.core_type<tc>, window_params = [{transform_indices = @transform_0, window_bounds = array<i64: 2, 8>}, {pipeline_mode = #tpu.pipeline_mode<synchronous>, transform_indices = @transform_1, window_bounds = array<i64: 64, 128>}, {transform_indices = @transform_2, window_bounds = array<i64: 8, 128>}, {transform_indices = @transform_3, window_bounds = array<i64: 1, 8, 128>}]} {
    %0 = arith.index_cast %arg1 : i32 to index
    %c0 = arith.constant 0 : index
    %1 = vector.load %arg2[%0, %c0] : memref<2x8xi32, #tpu.memory_space<vmem>>, vector<1x8xi32>
    %cst = arith.constant 0.000000e+00 : f32
    %2 = vector.broadcast %cst : f32 to vector<8x128xf32>
    %3 = tpu.iota {dimensions = array<i32: 0>} : vector<64x8xi32>
    %c0_i32 = arith.constant 0 : i32
    %4 = vector.broadcast %c0_i32 : i32 to vector<64x8xi32>
    %5 = arith.addi %3, %4 : vector<64x8xi32>
    %6 = vector.broadcast %1 : vector<1x8xi32> to vector<64x8xi32>
    %7 = arith.cmpi eq, %5, %6 : vector<64x8xi32>
    %8 = arith.extui %7 : vector<64x8xi1> to vector<64x8xi32>
    %9 = arith.sitofp %8 : vector<64x8xi32> to vector<64x8xf32>
    %c0_0 = arith.constant 0 : index
    %c0_1 = arith.constant 0 : index
    %10 = vector.load %arg3[%c0_0, %c0_1] : memref<64x128xf32, #tpu.memory_space<vmem>>, vector<64x128xf32>
    %cst_2 = arith.constant dense<0.000000e+00> : vector<8x128xf32>
    %11 = tpu.matmul %9, %10, %cst_2 {dimension_numbers = #tpu.dot_dimension_numbers<[0], [0], [1], [1], [0, 1, 1, 1], [], []>, precision = #tpu.contract_precision<fp32>} : vector<64x8xf32>, vector<64x128xf32>, vector<8x128xf32> -> vector<8x128xf32>
    %12 = arith.addf %2, %11 : vector<8x128xf32>
    %c0_3 = arith.constant 0 : index
    %c0_4 = arith.constant 0 : index
    %13 = vector.load %arg4[%c0_3, %c0_4] : memref<8x128xf32, #tpu.memory_space<vmem>>, vector<8x128xf32>
    %14 = arith.addf %12, %13 : vector<8x128xf32>
    %c0_5 = arith.constant 0 : index
    %c0_6 = arith.constant 0 : index
    %c0_7 = arith.constant 0 : index
    %15 = vector.load %arg5[%c0_5, %c0_6, %c0_7] : memref<1x8x128xf32, #tpu.memory_space<vmem>>, vector<1x8x128xf32>
    %16 = vector.shape_cast %15 : vector<1x8x128xf32> to vector<8x128xf32>
    %17 = vector.shape_cast %14 : vector<8x128xf32> to vector<1x8x128xf32>
    tpu.vector_store %arg5[%c0_5, %c0_6, %c0_7], %17 {strides = array<i32>} : memref<1x8x128xf32, #tpu.memory_space<vmem>>, vector<1x8x128xf32>,
    return
  }
  func.func @transform_0(%arg0: i32, %arg1: i32) -> (i32, i32) {
    %c0_i32 = arith.constant 0 : i32
    %c0_i32_0 = arith.constant 0 : i32
    return %c0_i32, %arg0 : i32, i32
  }
  func.func @transform_1(%arg0: i32, %arg1: i32) -> (i32, i32) {
    %c0_i32 = arith.constant 0 : i32
    %c0_i32_0 = arith.constant 0 : i32
    %c0_i32_1 = arith.constant 0 : i32
    return %c0_i32, %c0_i32_0 : i32, i32
  }
  func.func @transform_2(%arg0: i32, %arg1: i32) -> (i32, i32) {
    %c0_i32 = arith.constant 0 : i32
    %c0_i32_0 = arith.constant 0 : i32
    return %arg0, %c0_i32 : i32, i32
  }
  func.func @transform_3(%arg0: i32, %arg1: i32) -> (i32, i32, i32) {
    %c0_i32 = arith.constant 0 : i32
    %c0_i32_0 = arith.constant 0 : i32
    return %arg1, %arg0, %c0_i32 : i32, i32, i32
  }
}

</mosaic_0001>

<bundles_post_ra>
// kernel: tpu_custom_call.1
= control target key start
LH: loop header
LB: loop body
LE: loop exit
PB: predicated region body
PF: predicated region fallthrough
CT: control target
= control target key end

     0   :  { %8 = vsyncpa [#allocation3], 0  ;;  %s1785_s0 = inlined_call_operand.hbm [shape: s32[2,8], index: 0, kind: input, shape index: {}]   ;;  %s1786_s1 = inlined_call_operand.hbm [shape: f32[64,128], index: 1, kind: input, shape index: {}]   ;;  %s1787_s2 = inlined_call_operand.hbm [shape: f32[8,128], index: 2, kind: input, shape index: {}]   ;;  %s1788_s3 = inlined_call_operand.hbm [shape: f32[2,8,128], index: 3, kind: output, shape index: {}]  }
   0x1   :  { %9 = vsyncpa [#allocation6], 0 }
   0x2   :  { %10 = vsyncpa [#allocation4], 0 }
   0x3   :  { %12 = vsyncpa [#allocation4 + $0x1], 0  ;;  %s1420_s12 = smov 0   ;;  %s1422_s13 = smov 0  }
   0x4   :  { %s1424_s14 = smov 0   ;;  %s1426_s15 = smov 0  }
   0x5   :  { %s1428_s16 = smov 0   ;;  %s1430_s17 = smov 0  }
   0x6 LB: > { %s946_s18 = sadd.s32 4294967295, %s1390_s17   ;;  %s947_s19 = sadd.s32 4294967294, %s1390_s17   ;;  %s1390_s17 = sphi %s1430_s17, %s18_s17   ;;  %s1386_s16 = sphi %s1428_s16, %s1799_s16   ;;  %s1382_s15 = sphi %s1426_s15, %s1798_s15   ;;  %s1378_s14 = sphi %s1424_s14, %s1797_s14   ;;  %s1374_s13 = sphi %s1422_s13, %s1796_s13   ;;  %s1370_s12 = sphi %s1420_s12, %s1795_s12  }
   0x7   : > { %s27_s20 = sadd.s32 1, %s1386_s16  ;;  %s112_s21 = sadd.s32 1, %s1378_s14 }
   0x8   : > { %p28_p0 = scmp.ge.s32.totalorder %s27_s20, 2  ;;  %p122_p1 = scmp.ne.s32.totalorder %s1378_s14, %s1374_s13 }
   0x9   : > { %p123_p2 = scmp.eq.s32.totalorder %s946_s18, 1  ;;  %p128_p3 = scmp.ne.s32.totalorder %s1374_s13, %s1370_s12 }
   0xa   : > { %s1801_s20 = smov (%p28_p0, %s27_s20), 0  ;;  %p129_p5 = scmp.eq.s32.totalorder %s947_s19, 1 }
   0xb   : > { %p1460_p4 = por %p123_p2, %p122_p1  ;;  %s107_s23 = ssub.s32 %s1386_s16, %s1801_s20 }
   0xc   : > { %p948_p6 = scmp.ge.s32.totalorder %s1390_s17, 1  ;;  %p110_p7 = scmp.eq.s32.totalorder %s107_s23, 0 }
   0xd   : > { %p1467_p8 = por %p129_p5, %p128_p3  ;;  %p136_p9 = scmp.lt.s32.totalorder %s1390_s17, 3 }
   0xe   : > { %s1473_s25 = scalar_select %p110_p7, %s1378_s14, %s112_s21  }
   0xf   : > { %s1790_s24 = scalar_select %p1467_p8, 1, 0 }
  0x10   : > { %p1475_p10 = pnand %p948_p6, %p136_p9  ;;  %p1479_p11 = scmp.eq.s32.totalorder %s946_s18, 0 }
  0x11   : > { %s1392_s28 = smov [#allocation5]   ;;  %s1393_s4 = smov [#allocation2]  }
  0x12   : > { %p1152_p12 = pneg %p1475_p10  ;;  %s161_s29 = sshll.u32 %s1392_s28, 4  ;;  %s162_s29 = int_to_ptr.vmem [resolvable:$true] %s161_s29 }
  0x13   : > { %s151_s5 = sshll.u32 %s1393_s4, 4  ;;  %s1239_s6 = scalar_lea.vmem %s162_s29, 1024  ;;  %s152_s5 = int_to_ptr.vmem [resolvable:$true] %s151_s5 }
  0x14   : > { %p1487_p13 = pnand %p1479_p11, %p1152_p12  ;;  %p1240_p1 = scmp.ne.s32.totalorder %s162_s29, %s1239_s6 }
  0x15   : > { %p1247_p5 = scmp.lt.s32.totalorder %s162_s29, %s162_s29  ;;  %p1248_p6 = scmp.lt.s32.totalorder %s1239_s6, %s1239_s6 }
  0x16   : > { %p1230_p0 = pneg %p1487_p13 }
  0x17   : > { %p1249_p7 = por %p1248_p6, %p1247_p5 }
  0x18   : > { %p1242_p2 = pnand %p1240_p1, %p1230_p0 }
  0x1a   : > { %p1243_p3 = pneg %p1242_p2 }
  0x1c   : > { %p1250_p9 = pnand %p1249_p7, %p1243_p3 }
  0x1e   : > { %1253 = shalt.err (!%p1250_p9)
}
  0x1f   : > { %s1394_s7 = smov 128   ;;  %s1395_s8 = smov 8  }
  0x20   : > { %1158 = dma.hbm_to_vmem [thread:$0]  (!%p1487_p13), %s1786_s1, 1024, %s162_s29, [#allocation6], %s1394_s7, %s1394_s7, %s1395_s8  }
  0x21   : > { %s1265_s11 = scalar_lea.vmem %s152_s5, 32  ;;  %p1273_p8 = scmp.lt.s32.totalorder %s152_s5, %s152_s5 }
  0x22   : > { %p1266_p12 = scmp.ne.s32.totalorder %s152_s5, %s1265_s11  ;;  %p1274_p5 = scmp.lt.s32.totalorder %s1265_s11, %s1265_s11 }
  0x24   : > { %p1268_p1 = pnand %p1266_p12, %p1230_p0  ;;  %p1275_p3 = por %p1274_p5, %p1273_p8 }
  0x26   : > { %p1269_p2 = pneg %p1268_p1 }
  0x28   : > { %p1276_p6 = pnand %p1275_p3, %p1269_p2 }
  0x2a   : > { %1279 = shalt.err (!%p1276_p6)
}
  0x2b   : > { %1155 = dma.hbm_to_vmem [thread:$0]  (!%p1487_p13), %s1785_s0, 32, %s152_s5, [#allocation3]  }
  0x2c   : > { %s1396_s21 = smov [#allocation7]  }
  0x2d   : > { %s177_s23 = sshll.u32 %s1396_s21, 4  ;;  %s178_s23 = int_to_ptr.vmem [resolvable:$true] %s177_s23 }
  0x2e   : > { %s1291_s28 = scalar_lea.vmem %s178_s23, 128  ;;  %p1299_p1 = scmp.lt.s32.totalorder %s178_s23, %s178_s23 }
  0x2f   : > { %p1292_p7 = scmp.ne.s32.totalorder %s178_s23, %s1291_s28  ;;  %p1300_p8 = scmp.lt.s32.totalorder %s1291_s28, %s1291_s28 }
  0x31   : > { %p1294_p9 = pnand %p1292_p7, %p1230_p0  ;;  %p1301_p2 = por %p1300_p8, %p1299_p1 }
  0x33   : > { %p1295_p12 = pneg %p1294_p9 }
  0x35   : > { %p1302_p5 = pnand %p1301_p2, %p1295_p12 }
  0x37   : > { %1305 = shalt.err (!%p1302_p5)
}
  0x38   : > { %1161 = dma.hbm_to_vmem [thread:$0]  (!%p1487_p13), %s1787_s2, 128, %s178_s23, [#allocation6]  }
  0x39   : > { %190 = sbr.rel (%p1475_p10) target bundleno = 451 (0x1c3), region = 32 }
  0x3e   : > { %1357 = dma.done.wait (%p1479_p11), [#allocation3], 32  }
  0x3f   : > { %1359 = vsyncadd (%p1479_p11), [#allocation3], 4294967264 }
  0x40   : > { %1361 = dma.done.wait (%p1479_p11), [#allocation6], 1152  }
  0x41   : > { %1363 = vsyncadd (%p1479_p11), [#allocation6], 4294966144  ;;  %v219_v0 = vlaneseq  ;;  %v1397_v1 = vmov 0.0   ;;  %s217_s26 = scalar_lea.vmem [#allocation2], %s1382_s15  ;;  %v263_v6 = vld [vmem:[#allocation5 + $0x38] sm:$0xff]  ;;  %v262_v9 = vld [vmem:[#allocation5 + $0x30] sm:$0xff] }
  0x42   : > { %1043 = vmatprep.subr.mxu1 %v1397_v1  ;;  %1024 = vmatprep.subr.mxu0 %v1397_v1  ;;  %v1533_v4 = vld [vmem:[%s217_s26] ss:$0 sm:$0xff]  ;;  %v261_v10 = vld [vmem:[#allocation5 + $0x28] sm:$0xff]  ;;  %v260_v11 = vld [vmem:[#allocation5 + $0x20] sm:$0xff]  ;;  %v1544_v17 = vand.u32 4294901760, %v263_v6  ;;  %v1546_v18 = vand.u32 4294901760, %v262_v9 }
  0x43   : > { %v1529_v2 = vshrl.u32 %v219_v0, 7  ;;  %v259_v12 = vld [vmem:[#allocation5 + $0x18] sm:$0xff]  ;;  %v258_v13 = vld [vmem:[#allocation5 + $0x10] sm:$0xff]  ;;  %v257_v14 = vld [vmem:[#allocation5 + $0x8] sm:$0xff]  ;;  %v1548_v19 = vand.u32 4294901760, %v261_v10  ;;  %v1550_v20 = vand.u32 4294901760, %v260_v11 }
  0x44   : > { %v256_v21 = vld [vmem:[#allocation5] sm:$0xff]  ;;  %v1553_v22 = vand.u32 4294901760, %v259_v12  ;;  %v1555_v23 = vand.u32 4294901760, %v258_v13  ;;  %v1557_v24 = vand.u32 4294901760, %v257_v14  ;;  %v1560_v25 = vsub.f32 %v263_v6, %v1544_v17  ;;  %1025 = vmatpush3.msra.mxu0 %v1544_v17  ;;  %s214_s27 = sand.u32 1, %s1374_s13   ;;  %s967_s5 = sshll.u32 %s1382_s15, 7 }
  0x45   : > { %v221_v3 = vadd.s32 8, %v1529_v2  ;;  %v222_v5 = vadd.s32 16, %v1529_v2  ;;  %vm232_vm0 = vcmp.eq.s32.totalorder %v1529_v2, %v1533_v4  ;;  %v223_v8 = vadd.s32 24, %v1529_v2  ;;  %1026 = vmatprep.subr.mxu0 %v1397_v1  ;;  %s956_s30 = sshll.u32 %s214_s27, 3  ;;  %s852_s10 = scalar_lea.hbm %s1788_s3, %s967_s5 }
  0x46   : > { %v958_v7 = vsel %vm232_vm0, 1.0, %v1397_v1  ;;  %v224_v16 = vadd.s32 32, %v1529_v2  ;;  %v1563_v26 = vsub.f32 %v262_v9, %v1546_v18  ;;  %v1566_v27 = vsub.f32 %v261_v10, %v1548_v19  ;;  %1027 = vmatpush3.msra.mxu0 %v1546_v18  ;;  %s216_s6 = scalar_lea.vmem [#allocation8], %s956_s30  ;;  %s840_s11 = scalar_lea.sflag [#allocation4], %s214_s27 }
  0x47   : > { %vm233_vm1 = vcmp.eq.s32.totalorder %v221_v3, %v1533_v4  ;;  %265 = vxpose.xlu0.b32.start [1/8] (short) (narrow) %v958_v7, 8  ;;  %vm234_vm2 = vcmp.eq.s32.totalorder %v222_v5, %v1533_v4  ;;  %vm235_vm3 = vcmp.eq.s32.totalorder %v223_v8, %v1533_v4  ;;  %v1569_v28 = vsub.f32 %v260_v11, %v1550_v20  ;;  %s854_s7 = sshll.u32 %s216_s6, 4  ;;  %s1399_s19 = smov [#allocation8]   ;;  %s855_s7 = int_to_ptr.vmem [resolvable:$true] %s854_s7 }
  0x48   : > { %v959_v15 = vsel %vm233_vm1, 1.0, %v1397_v1  ;;  %v960_v29 = vsel %vm234_vm2, 1.0, %v1397_v1  ;;  %v1576_v30 = vsub.f32 %v259_v12, %v1553_v22  ;;  %v1579_v31 = vsub.f32 %v258_v13, %v1555_v23  ;;  %1028 = vmatprep.subr.mxu0 %v1397_v1  ;;  %s1306_s18 = scalar_lea.vmem %s855_s7, 128  ;;  %s1310_s21 = sshll.u32 %s1399_s19, 4  ;;  %s1311_s21 = int_to_ptr.vmem [resolvable:$false] %s1310_s21 }
  0x49   : > { %v1581_v32 = vand.u32 4294901760, %v256_v21  ;;  %v403_v33 = vand.u32 4294901760, %v1560_v25  ;;  %v410_v34 = vand.u32 4294901760, %v1563_v26  ;;  %v417_v35 = vand.u32 4294901760, %v1566_v27  ;;  %1029 = vmatpush3.msra.mxu0 %v1548_v19  ;;  %p1307_p10 = scmp.ne.s32.totalorder %s855_s7, %s1306_s18  ;;  %s1312_s15 = scalar_lea.vmem %s1311_s21, 256 }
  0x4a   : > { %v424_v36 = vand.u32 4294901760, %v1569_v28  ;;  %v1590_v37 = vsub.f32 %v257_v14, %v1557_v24  ;;  %v431_v41 = vand.u32 4294901760, %v1576_v30  ;;  %v961_v42 = vsel %vm235_vm3, 1.0, %v1397_v1  ;;  %1030 = vmatprep.subr.mxu0 %v1397_v1  ;;  %p1313_p0 = scmp.lt.s32.totalorder %s855_s7, %s1311_s21  ;;  %p1314_p3 = scmp.lt.s32.totalorder %s1312_s15, %s1306_s18 }
  0x4b   : > { %266 = vxpose.xlu0.b32.cont [2/8] (short) (narrow) %v959_v15, 8  ;;  %v404_v38 = vsub.f32 %v1560_v25, %v403_v33  ;;  %v411_v39 = vsub.f32 %v1563_v26, %v410_v34  ;;  %v418_v40 = vsub.f32 %v1566_v27, %v417_v35  ;;  %vm236_vm4 = vcmp.eq.s32.totalorder %v224_v16, %v1533_v4  ;;  %p1308_p11 = pnand %p1307_p10, %p1460_p4 }
  0x4c   : > { %v225_v43 = vadd.s32 40, %v1529_v2  ;;  %v1609_v44 = vsub.f32 %v256_v21, %v1581_v32  ;;  %v425_v47 = vsub.f32 %v1569_v28, %v424_v36  ;;  %v438_v48 = vand.u32 4294901760, %v1579_v31  ;;  %1031 = vmatpush3.msra.mxu0 %v1550_v20  ;;  %p1315_p6 = por %p1314_p3, %p1313_p0 }
  0x4d   : > { %v405_v45 = vand.u32 4294901760, %v404_v38  ;;  %v412_v46 = vand.u32 4294901760, %v411_v39  ;;  %v419_v49 = vand.u32 4294901760, %v418_v40  ;;  %v432_v50 = vsub.f32 %v1576_v30, %v431_v41  ;;  %1032 = vmatprep.subr.mxu0 %v1397_v1  ;;  %p1309_p13 = pneg %p1308_p11 }
  0x4e   : > { %v445_v51 = vand.u32 4294901760, %v1590_v37  ;;  %v962_v52 = vsel %vm236_vm4, 1.0, %v1397_v1  ;;  %v226_v53 = vadd.s32 48, %v1529_v2  ;;  %vm237_vm5 = vcmp.eq.s32.totalorder %v225_v43, %v1533_v4  ;;  %1033 = vmatpush3.msra.mxu0 %v1553_v22 }
  0x4f   : > { %267 = vxpose.xlu0.b32.cont [3/8] (short) (narrow) %v960_v29, 8  ;;  %1044 = vmatpush3.msra.mxu1 %v405_v45  ;;  %v426_v54 = vand.u32 4294901760, %v425_v47  ;;  %v439_v55 = vsub.f32 %v1579_v31, %v438_v48  ;;  %v452_v56 = vand.u32 4294901760, %v1609_v44  ;;  %vm1398_vm6 = vmmov 0   ;;  %p1316_p7 = pnand %p1315_p6, %p1309_p13 }
  0x50   : > { %1045 = vmatprep.subr.mxu1 %v1397_v1  ;;  %1059 = vmatprep.mubr.msk.f32.mxu1 %vm1398_vm6, %v1397_v1  ;;  %v433_v57 = vand.u32 4294901760, %v432_v50  ;;  %v446_v58 = vsub.f32 %v1590_v37, %v445_v51  ;;  %v963_v59 = vsel %vm237_vm5, 1.0, %v1397_v1  ;;  %vm238_vm7 = vcmp.eq.s32.totalorder %v226_v53, %v1533_v4 }
  0x51   : > { %1046 = vmatpush3.msra.mxu1 %v412_v46  ;;  %v227_v60 = vadd.s32 56, %v1529_v2  ;;  %v440_v61 = vand.u32 4294901760, %v439_v55  ;;  %v453_v62 = vsub.f32 %v1609_v44, %v452_v56  ;;  %1034 = vmatprep.subr.mxu0 %v1397_v1  ;;  %v964_v0 = vsel %vm238_vm7, 1.0, %v1397_v1 }
  0x52   : > { %1047 = vmatprep.subr.mxu1 %v1397_v1  ;;  %1035 = vmatpush3.msra.mxu0 %v1555_v23  ;;  %v447_v63 = vand.u32 4294901760, %v446_v58  ;;  %vm297_vm9 = vcmask 523264  }
  0x53   : > { %268 = vxpose.xlu0.b32.cont [4/8] (short) (narrow) %v961_v42, 8  ;;  %1048 = vmatpush3.msra.mxu1 %v419_v49  ;;  %vm239_vm8 = vcmp.eq.s32.totalorder %v227_v60, %v1533_v4  ;;  %v454_v2 = vand.u32 4294901760, %v453_v62 }
  0x54   : > { %1049 = vmatprep.subr.mxu1 %v1397_v1  ;;  %1036 = vmatprep.subr.mxu0 %v1397_v1  ;;  %v965_v3 = vsel %vm239_vm8, 1.0, %v1397_v1 }
  0x55   : > { %1050 = vmatpush3.msra.mxu1 %v426_v54  ;;  %1037 = vmatpush3.msra.mxu0 %v1557_v24 }
  0x56   : > { %1051 = vmatprep.subr.mxu1 %v1397_v1  ;;  %1038 = vmatprep.subr.mxu0 %v1397_v1 }
  0x57   : > { %269 = vxpose.xlu0.b32.cont [5/8] (short) (narrow) %v962_v52, 8  ;;  %1052 = vmatpush3.msra.mxu1 %v433_v57 }
  0x58   : > { %1053 = vmatprep.subr.mxu1 %v1397_v1  ;;  %1039 = vmatpush3.msra.mxu0 %v1581_v32 }
  0x59   : > { %1054 = vmatpush3.msra.mxu1 %v440_v61  ;;  %1040 = vmatprep.mubr.msk.f32.mxu0 %vm1398_vm6, %v1397_v1 }
  0x5a   : > { %1055 = vmatprep.subr.mxu1 %v1397_v1  ;;  %1062 = vmatprep.subr.mxu0 %v1397_v1 }
  0x5b   : > { %270 = vxpose.xlu0.b32.cont [6/8] (short) (narrow) %v963_v59, 8  ;;  %1056 = vmatpush3.msra.mxu1 %v447_v63 }
  0x5c   : > { %1057 = vmatprep.subr.mxu1 %v1397_v1 }
  0x5d   : > { %1058 = vmatpush3.msra.mxu1 %v454_v2 }
  0x5e   : > { %1081 = vmatprep.subr.mxu1 %v1397_v1 }
  0x5f   : > { %271 = vxpose.xlu0.b32.cont [7/8] (short) (narrow) %v964_v0, 8 }
  0x63   : > { %272 = vxpose.xlu0.b32.end [8/8] (short) (narrow) %v965_v3, 8 }
  0xc3   : > { %v281_v4 = vpop.trf.xlu0 }
  0xc4   : > { %v299_v5 = vsel %vm297_vm9, %v281_v4, 0 }
  0xc5   : > { %v1662_v6 = vand.u32 4294901760, %v299_v5 }
  0xc7   : > { %v375_v7 = vsub.f32 %v299_v5, %v1662_v6  ;;  %1060 = vmatmul.mubr.f32.vlgmr.msra.gmra.mxu1 %v1662_v6 }
  0xc8   : > { %1082 = vmatpush3.msra.mxu1 %v1544_v17  ;;  %1097 = vmatprep.mubr.msk.f32.mxu1 %vm1398_vm6, %v1397_v1 }
  0xc9   : > { %v376_v8 = vand.u32 4294901760, %v375_v7  ;;  %1083 = vmatprep.subr.mxu1 %v1397_v1 }
  0xca   : > { %1084 = vmatpush3.msra.mxu1 %v1546_v18 }
  0xcb   : > { %1085 = vmatprep.subr.mxu1 %v1397_v1  ;;  %v377_v9 = vsub.f32 %v375_v7, %v376_v8 }
  0xcc   : > { %1086 = vmatpush3.msra.mxu1 %v1548_v19 }
  0xcd   : > { %1087 = vmatprep.subr.mxu1 %v1397_v1  ;;  %v378_v10 = vand.u32 4294901760, %v377_v9 }
  0xce   : > { %1088 = vmatpush3.msra.mxu1 %v1550_v20 }
  0xcf   : > { %1089 = vmatprep.subr.mxu1 %v1397_v1  ;;  %1041 = vmatmul.mubr.f32.vlgmr.msra.gmra.mxu0 %v378_v10 }
  0xd0   : > { %1063 = vmatpush3.msra.mxu0 %v1560_v25  ;;  %1090 = vmatpush3.msra.mxu1 %v1553_v22 }
  0xd1   : > { %1064 = vmatprep.subr.mxu0 %v1397_v1  ;;  %1091 = vmatprep.subr.mxu1 %v1397_v1 }
  0xd2   : > { %1065 = vmatpush3.msra.mxu0 %v1563_v26  ;;  %1092 = vmatpush3.msra.mxu1 %v1555_v23 }
  0xd3   : > { %1066 = vmatprep.subr.mxu0 %v1397_v1  ;;  %1093 = vmatprep.subr.mxu1 %v1397_v1 }
  0xd4   : > { %1067 = vmatpush3.msra.mxu0 %v1566_v27  ;;  %1094 = vmatpush3.msra.mxu1 %v1557_v24 }
  0xd5   : > { %1068 = vmatprep.subr.mxu0 %v1397_v1  ;;  %1095 = vmatprep.subr.mxu1 %v1397_v1 }
  0xd6   : > { %1069 = vmatpush3.msra.mxu0 %v1569_v28  ;;  %1096 = vmatpush3.msra.mxu1 %v1581_v32 }
  0xd7   : > { %1070 = vmatprep.subr.mxu0 %v1397_v1  ;;  %1098 = vmatmul.mubr.f32.vlgmr.msra.gmra.mxu1 %v376_v8 }
  0xd8   : > { %1119 = vmatprep.subr.mxu1 %v1397_v1  ;;  %1071 = vmatpush3.msra.mxu0 %v1576_v30 }
  0xd9   : > { %1120 = vmatpush3.msra.mxu1 %v1544_v17  ;;  %1072 = vmatprep.subr.mxu0 %v1397_v1 }
  0xda   : > { %1121 = vmatprep.subr.mxu1 %v1397_v1  ;;  %1073 = vmatpush3.msra.mxu0 %v1579_v31 }
  0xdb   : > { %1122 = vmatpush3.msra.mxu1 %v1546_v18  ;;  %1074 = vmatprep.subr.mxu0 %v1397_v1 }
  0xdc   : > { %1123 = vmatprep.subr.mxu1 %v1397_v1  ;;  %1075 = vmatpush3.msra.mxu0 %v1590_v37 }
  0xdd   : > { %1124 = vmatpush3.msra.mxu1 %v1548_v19  ;;  %1076 = vmatprep.subr.mxu0 %v1397_v1  ;;  %v264_v19 = vld [vmem:[#allocation7] sm:$0xff] }
  0xde   : > { %1125 = vmatprep.subr.mxu1 %v1397_v1  ;;  %1077 = vmatpush3.msra.mxu0 %v1609_v44 }
  0xdf   : > { %1078 = vmatprep.mubr.msk.f32.mxu0 %vm1398_vm6, %v1397_v1  ;;  %1126 = vmatpush3.msra.mxu1 %v1550_v20 }
  0xe0   : > { %1079 = vmatmul.mubr.f32.vlgmr.msra.gmra.mxu0 %v375_v7  ;;  %1100 = vmatprep.subr.mxu0 %v1397_v1 }
  0xe1   : > { %1127 = vmatprep.subr.mxu1 %v1397_v1  ;;  %1101 = vmatpush3.msra.mxu0 %v403_v33 }
  0xe2   : > { %1128 = vmatpush3.msra.mxu1 %v1553_v22  ;;  %1102 = vmatprep.subr.mxu0 %v1397_v1 }
  0xe3   : > { %1129 = vmatprep.subr.mxu1 %v1397_v1  ;;  %1103 = vmatpush3.msra.mxu0 %v410_v34 }
  0xe4   : > { %1130 = vmatpush3.msra.mxu1 %v1555_v23  ;;  %1104 = vmatprep.subr.mxu0 %v1397_v1 }
  0xe5   : > { %1131 = vmatprep.subr.mxu1 %v1397_v1  ;;  %1105 = vmatpush3.msra.mxu0 %v417_v35 }
  0xe6   : > { %1132 = vmatpush3.msra.mxu1 %v1557_v24  ;;  %1106 = vmatprep.subr.mxu0 %v1397_v1 }
  0xe7   : > { %1133 = vmatprep.subr.mxu1 %v1397_v1  ;;  %1107 = vmatpush3.msra.mxu0 %v424_v36 }
  0xe8   : > { %1134 = vmatpush3.msra.mxu1 %v1581_v32  ;;  %1135 = vmatprep.mubr.msk.f32.mxu1 %vm1398_vm6, %v1397_v1 }
  0xe9   : > { %1108 = vmatprep.subr.mxu0 %v1397_v1  ;;  %1136 = vmatmul.mubr.f32.vlgmr.msra.gmra.mxu1 %v1662_v6 }
  0xea   : > { %1109 = vmatpush3.msra.mxu0 %v431_v41  ;;  %1116 = vmatprep.mubr.msk.f32.mxu0 %vm1398_vm6, %v1397_v1 }
  0xeb   : > { %1110 = vmatprep.subr.mxu0 %v1397_v1 }
  0xec   : > { %1111 = vmatpush3.msra.mxu0 %v438_v48 }
  0xed   : > { %1112 = vmatprep.subr.mxu0 %v1397_v1 }
  0xee   : > { %1113 = vmatpush3.msra.mxu0 %v445_v51 }
  0xef   : > { %1114 = vmatprep.subr.mxu0 %v1397_v1 }
  0xf0   : > { %1115 = vmatpush3.msra.mxu0 %v452_v56 }
  0xf1   : > { %1117 = vmatmul.mubr.f32.vlgmr.msra.gmra.mxu0 %v1662_v6 }
 0x187   : > { %v491_v11 = vpop.f32.mrf.mxu1 }
 0x189   : > { %v1061_v12 = vpop.f32.mrf.mxu1 }
 0x18f   : > { %v380_v13 = vpop.f32.mrf.mxu0 }
 0x190   : > { %v381_v20 = vadd.f32 %v380_v13, %v264_v19 }
 0x191   : > { %v1042_v14 = vpop.f32.mrf.mxu0 }
 0x192   : > { %v492_v22 = vadd.f32 %v491_v11, %v381_v20 }
 0x197   : > { %v660_v15 = vpop.f32.mrf.mxu1 }
 0x199   : > { %v1099_v16 = vpop.f32.mrf.mxu1 }
 0x1a0   : > { %v579_v17 = vpop.f32.mrf.mxu0 }
 0x1a1   : > { %v580_v23 = vadd.f32 %v579_v17, %v492_v22 }
 0x1a2   : > { %v1080_v18 = vpop.f32.mrf.mxu0 }
 0x1a3   : > { %v661_v24 = vadd.f32 %v660_v15, %v580_v23 }
 0x1a9   : > { %v834_v21 = vpop.f32.mrf.mxu1 }
 0x1ab   : > { %v1137_v1 = vpop.f32.mrf.mxu1 }
 0x1b1   : > { %v755_v25 = vpop.f32.mrf.mxu0 }
 0x1b2   : > { %v756_v26 = vadd.f32 %v755_v25, %v661_v24 }
 0x1b3   : > { %v1118_v27 = vpop.f32.mrf.mxu0 }
 0x1b4   : > { %v835_v28 = vadd.f32 %v834_v21, %v756_v26 }
 0x1b6   : > { %838 = vst [vmem:[%s216_s6] sm:$0xff] %v835_v28 }
 0x1b7   : > { %1319 = shalt.err (!%p1316_p7)
}
 0x1b8   : > { %s1320_s23 = scalar_lea.hbm %s852_s10, 128  ;;  %s1324_s4 = scalar_lea.hbm %s1788_s3, 256 }
 0x1b9   : > { %p1321_p9 = scmp.ne.s32.totalorder %s852_s10, %s1320_s23  ;;  %p1325_p8 = scmp.lt.s32.totalorder %s852_s10, %s1788_s3 }
 0x1ba   : > { %p1326_p2 = scmp.lt.s32.totalorder %s1324_s4, %s1320_s23 }
 0x1bb   : > { %p1322_p12 = pnand %p1321_p9, %p1460_p4 }
 0x1bc   : > { %p1327_p5 = por %p1326_p2, %p1325_p8 }
 0x1bd   : > { %p1323_p1 = pneg %p1322_p12 }
 0x1bf   : > { %p1328_p10 = pnand %p1327_p5, %p1323_p1 }
 0x1c1   : > { %1331 = shalt.err (!%p1328_p10)
}
 0x1c2   : > { %1150 = dma.vmem_to_hbm [thread:$0]  (%p1460_p4), %s855_s7, 128, %s852_s10, %s840_s11  }
 0x1c3 PF: > { %p1172_p11 = scmp.ge.s32.totalorder %s1390_s17, 2  ;;  %s866_s30 = sand.u32 1, %s1370_s12  }
 0x1c4   : > { %p1794_p13 = scmp.ne.s32.totalorder %s1790_s24, 0  ;;  %s867_s5 = scalar_lea.sflag [#allocation4], %s866_s30 }
 0x1c6   : > { %p1163_p0 = pnand %p1172_p11, %p1794_p13 }
 0x1c8   : > { %p1164_p3 = pneg %p1163_p0 }
 0x1ca   : > { %1365 = dma.done.wait (%p1164_p3), %s867_s5, 128  }
 0x1cb   : > { %1367 = vsyncadd (%p1164_p3), %s867_s5, 4294967168  ;;  %s18_s17 = sadd.s32 1, %s1390_s17   ;;  %s1795_s12 = smov %s1374_s13 }
 0x1cc   : > { %p15_p6 = scmp.ge.s32.totalorder %s18_s17, 4   ;;  %s1796_s13 = smov %s1378_s14 }
 0x1cd   : > { %s1797_s14 = smov %s1473_s25  ;;  %s1798_s15 = smov %s1386_s16 }
 0x1ce   : > { %s1799_s16 = smov %s1801_s20  ;;  %17 = sbr.rel (!%p15_p6) target bundleno = 6 (0x6), region = 80 }
 0x1d3   :  { %872 = vsyncpa [#allocation3], 1 }
 0x1d4   :  { %874 = vsyncpa [#allocation3 + $0x1], 1 }
 0x1d5   :  { %875 = vsyncpa [#allocation6], 1 }
 0x1d6   :  { %876 = vsyncpa [#allocation4], 1 }
 0x1d7   :  { %878 = vsyncpa [#allocation4 + $0x1], 1 }

</bundles_post_ra>
